<compile_context>
chip_gen: v7x
topology: tpu7x:2x2x1
jax: 0.10.0
libtpu: 0.0.40
codegen_flags: <defaults>
</compile_context>

<pallas_src>
import functools

import jax
import jax.numpy as jnp
from jax.experimental import pallas as pl
from jax.experimental.pallas import tpu as pltpu


def _round_up(x, m):
    return (x + m - 1) // m * m


def _pick_tile(np_, target):
    """Largest multiple of 128 that divides np_ and is <= target (always >=128)."""
    m = np_ // 128
    best = 128
    for d in range(1, m + 1):
        if m % d == 0 and 128 * d <= target:
            best = 128 * d
    return best


# ----------------------------- kernel ---------------------------------------


def _propagate_kernel(z_resident, tk, apply_logsoftmax, num_valid,
                      a_ref, z_ref, b_ref, out_ref, acc_ref):
    """out_tile = (A @ Z)_tile + b, optionally followed by masked log_softmax."""
    k = pl.program_id(1)

    @pl.when(k == 0)
    def _():
        acc_ref[...] = jnp.zeros_like(acc_ref)

    if z_resident:
        # Z is fully resident in VMEM; slice the current K chunk in-kernel.
        start = pl.multiple_of(k * tk, tk)
        z = z_ref[pl.ds(start, tk), :]
    else:
        z = z_ref[...]

    acc_ref[...] += jnp.dot(a_ref[...], z, preferred_element_type=jnp.float32)

    @pl.when(k == pl.num_programs(1) - 1)
    def _():
        logits = acc_ref[...] + b_ref[...]
        if apply_logsoftmax:
            col = jax.lax.broadcasted_iota(jnp.int32, logits.shape, 1)
            valid = col < num_valid
            m = jnp.max(jnp.where(valid, logits, -jnp.inf), axis=1, keepdims=True)
            s = logits - m
            p = jnp.where(valid, jnp.exp(s), 0.0)
            lse = jnp.log(jnp.sum(p, axis=1, keepdims=True))
            out_ref[...] = (s - lse).astype(out_ref.dtype)
        else:
            out_ref[...] = logits.astype(out_ref.dtype)


def _propagate(a_p, z_p, b_p, out_dtype, *, tm, tk, np_, cw, z_resident,
               apply_logsoftmax, num_valid, vmem_limit):
    n_row = np_ // tm
    n_k = np_ // tk

    if z_resident:
        z_spec = pl.BlockSpec((np_, cw), lambda i, k: (0, 0))       # resident
    else:
        z_spec = pl.BlockSpec((tk, cw), lambda i, k: (k, 0))        # streamed

    kernel = functools.partial(
        _propagate_kernel, z_resident, tk, apply_logsoftmax, num_valid)

    return pl.pallas_call(
        kernel,
        out_shape=jax.ShapeDtypeStruct((np_, cw), out_dtype),
        grid=(n_row, n_k),
        in_specs=[
            pl.BlockSpec((tm, tk), lambda i, k: (i, k)),   # A_hat row/K tile
            z_spec,                                        # features
            pl.BlockSpec((1, cw), lambda i, k: (0, 0)),    # bias (resident)
        ],
        out_specs=pl.BlockSpec((tm, cw), lambda i, k: (i, 0)),
        scratch_shapes=[pltpu.VMEM((tm, cw), jnp.float32)],
        compiler_params=pltpu.CompilerParams(
            dimension_semantics=("parallel", "arbitrary"),
            vmem_limit_bytes=vmem_limit),
    )(a_p, z_p, b_p)


# ----------------------------- wrapper --------------------------------------


def sgc_forward(a_hat, x, w1, b1, w2, b2, *, tm_target=512, tk_target=2048):
    n, _ = x.shape
    c = w2.shape[1]

    f32 = jnp.float32
    bf16 = jnp.bfloat16

    np_ = _round_up(n, 128)                 # node dim padded to lanes only
    cp = _round_up(c, 128)                  # class dim padded to lanes

    # Row tile capped at N/2 so >= 2 row tiles exist (v7x megacore split);
    # K tile large to amortize per-grid-step overhead. Both divide np_ exactly.
    tm = _pick_tile(np_, min(tm_target, max(128, np_ // 2)))
    tk = _pick_tile(np_, tk_target)

    # ---- A_hat: zero-copy when already bf16 and lane-aligned (pad/cast hoisted
    # ---- to the caller); otherwise pad/cast here.
    if a_hat.shape == (np_, np_) and a_hat.dtype == bf16:
        a_p = a_hat
    else:
        a_p = jnp.zeros((np_, np_), bf16).at[:n, :n].set(a_hat.astype(bf16))

    # ---- Fold W2 into the pre-transform (exact algebra):
    #      (A (X W1) + b1) W2 == A (X (W1 W2)) + (b1 W2)
    w12 = jnp.dot(w1.astype(f32), w2.astype(f32))                        # (F, C)
    b1w2 = jnp.dot(jnp.reshape(b1, (1, -1)).astype(f32), w2.astype(f32))  # (1, C)

    # Tiny feature transform: plain XLA dot (K = in_feats, not worth a kernel).
    z1 = jnp.dot(x.astype(f32), w12)                                      # (N, C)
    z1_p = jnp.zeros((np_, cp), bf16).at[:n, :c].set(z1.astype(bf16))
    b1_p = jnp.zeros((1, cp), f32).at[:, :c].set(b1w2)
    b2_p = jnp.zeros((1, cp), f32).at[:, :c].set(
        jnp.reshape(b2, (1, -1)).astype(f32))

    # Hold Z resident in VMEM when it fits comfortably (<= 16 MiB).
    z_resident = np_ * cp * 2 <= 16 * 1024 * 1024

    # VMEM budget: double-buffered A tile + Z + acc + double-buffered out + bias.
    a_bytes = 2 * tm * tk * 2
    z_bytes = np_ * cp * 2 if z_resident else 2 * tk * cp * 2
    acc_bytes = tm * cp * 4
    out_bytes = 2 * tm * cp * 4
    need = a_bytes + z_bytes + acc_bytes + out_bytes + 4 * cp * 4
    vmem_limit = min(48 * 1024 * 1024, max(32 * 1024 * 1024, int(need * 1.5)))

    common = dict(tm=tm, tk=tk, np_=np_, cw=cp, z_resident=z_resident,
                  num_valid=c, vmem_limit=vmem_limit)

    # ---- pass 1: Z2 = A_hat @ Z1' + b1'   (first A stream) ----
    z2 = _propagate(a_p, z1_p, b1_p, bf16, apply_logsoftmax=False, **common)

    # ---- pass 2: OUT = log_softmax(A_hat @ Z2 + b2)  (second A stream) ----
    out_p = _propagate(a_p, z2, b2_p, f32, apply_logsoftmax=True, **common)

    return out_p[:n, :c]


# ----------------------------- reference ------------------------------------


def sgc_reference(a_hat, x, w1, b1, w2, b2):
    h1 = a_hat @ (x @ w1) + b1
    h2 = a_hat @ (h1 @ w2) + b2
    return jax.nn.log_softmax(h2, axis=1)


def xavier_uniform(key, shape):
    fan_in, fan_out = shape
    limit = jnp.sqrt(6.0 / (fan_in + fan_out))
    return jax.random.uniform(key, shape, jnp.float32, -limit, limit)


if __name__ == "__main__":
    # Small deterministic synthetic problem (N multiple of 128 -> no pad copies,
    # 2 row tiles x 1 K tile to still exercise the tiled path).
    N = 256
    IN_FEATS = 8
    HIDDEN = 32
    NUM_CLASSES = 4

    key = jax.random.PRNGKey(0)
    k_adj, k_x, k_w1, k_w2 = jax.random.split(key, 4)

    # Random undirected graph with self-loops, symmetric normalization.
    adj_raw = (jax.random.uniform(k_adj, (N, N)) < 0.1).astype(jnp.float32)
    adj = jnp.maximum(adj_raw, adj_raw.T)
    adj = jnp.maximum(adj, jnp.eye(N, dtype=jnp.float32))
    deg = jnp.sum(adj, axis=1)
    d_inv_sqrt = 1.0 / jnp.sqrt(deg)
    a_hat = adj * d_inv_sqrt[:, None] * d_inv_sqrt[None, :]

    x = jax.random.normal(k_x, (N, IN_FEATS), jnp.float32)

    # GraphConv parameters (xavier_uniform weights, zero biases — DGL default init).
    w1 = xavier_uniform(k_w1, (IN_FEATS, HIDDEN))
    b1 = jnp.zeros((1, HIDDEN), jnp.float32)
    w2 = xavier_uniform(k_w2, (HIDDEN, NUM_CLASSES))
    b2 = jnp.zeros((1, NUM_CLASSES), jnp.float32)

    # Hoist the A_hat bf16 cast out of the forward path (done once, reused).
    a_hat_bf16 = a_hat.astype(jnp.bfloat16)

    out = sgc_forward(a_hat_bf16, x, w1, b1, w2, b2)
    out = jax.block_until_ready(out)

    ref = sgc_reference(a_hat, x, w1, b1, w2, b2)
    assert out.shape == (N, NUM_CLASSES)
    # bf16 A_hat / streamed features with f32 accumulation: tolerance loosened
    # accordingly (f32 reference).
    max_err = float(jnp.max(jnp.abs(out - ref)))
    assert max_err < 3e-2, f"max abs err {max_err}"

    print("KERNEL_OK")
</pallas_src>

<mosaic_0001>
module attributes {stable_mosaic.version = 11 : i64} {
  func.func @_propagate_kernel(%arg0: i32, %arg1: i32, %arg2: memref<128x256xbf16, #tpu.memory_space<vmem>>, %arg3: memref<256x128xbf16, #tpu.memory_space<vmem>>, %arg4: memref<1x128xf32, #tpu.memory_space<vmem>>, %arg5: memref<128x128xbf16, #tpu.memory_space<vmem>>, %arg6: memref<128x128xf32, #tpu.memory_space<vmem>>) attributes {dimension_semantics = [#tpu.dimension_semantics<parallel>, #tpu.dimension_semantics<arbitrary>], iteration_bounds = array<i64: 2, 1>, scalar_prefetch = 0 : i64, scratch_operands = 1 : i64, tpu.core_type = #tpu.core_type<tc>, window_params = [{transform_indices = @transform_0, window_bounds = array<i64: 128, 256>}, {pipeline_mode = #tpu.pipeline_mode<synchronous>, transform_indices = @transform_1, window_bounds = array<i64: 256, 128>}, {pipeline_mode = #tpu.pipeline_mode<synchronous>, transform_indices = @transform_2, window_bounds = array<i64: 1, 128>}, {transform_indices = @transform_3, window_bounds = array<i64: 128, 128>}]} {
    %c0_i32 = arith.constant 0 : i32
    %0 = arith.cmpi eq, %arg1, %c0_i32 : i32
    %1 = arith.extui %0 : i1 to i32
    %c0_i32_0 = arith.constant 0 : i32
    %2 = arith.cmpi ne, %1, %c0_i32_0 : i32
    scf.if %2 {
      %cst_9 = arith.constant 0.000000e+00 : f32
      %15 = vector.broadcast %cst_9 : f32 to vector<128x128xf32>
      %c0_10 = arith.constant 0 : index
      %c0_11 = arith.constant 0 : index
      %16 = vector.load %arg6[%c0_10, %c0_11] : memref<128x128xf32, #tpu.memory_space<vmem>>, vector<128x128xf32>
      tpu.vector_store %arg6[%c0_10, %c0_11], %15 {strides = array<i32>} : memref<128x128xf32, #tpu.memory_space<vmem>>, vector<128x128xf32>,
    } else {
    }
    %c256_i32 = arith.constant 256 : i32
    %3 = arith.muli %arg1, %c256_i32 : i32
    %4 = tpu.assume_multiple %3, 256 : i32
    %5 = arith.index_cast %4 : i32 to index
    %c0 = arith.constant 0 : index
    %6 = vector.load %arg3[%5, %c0] : memref<256x128xbf16, #tpu.memory_space<vmem>>, vector<256x128xbf16>
    %c0_1 = arith.constant 0 : index
    %c0_2 = arith.constant 0 : index
    %7 = vector.load %arg6[%c0_1, %c0_2] : memref<128x128xf32, #tpu.memory_space<vmem>>, vector<128x128xf32>
    %c0_3 = arith.constant 0 : index
    %c0_4 = arith.constant 0 : index
    %8 = vector.load %arg2[%c0_3, %c0_4] : memref<128x256xbf16, #tpu.memory_space<vmem>>, vector<128x256xbf16>
    %cst = arith.constant dense<0.000000e+00> : vector<128x128xf32>
    %9 = tpu.matmul %8, %6, %cst {dimension_numbers = #tpu.dot_dimension_numbers<[1], [0], [0], [1], [0, 0, 1, 1], [], []>} : vector<128x256xbf16>, vector<256x128xbf16>, vector<128x128xf32> -> vector<128x128xf32>
    %10 = arith.addf %7, %9 : vector<128x128xf32>
    %c0_5 = arith.constant 0 : index
    %c0_6 = arith.constant 0 : index
    %11 = vector.load %arg6[%c0_5, %c0_6] : memref<128x128xf32, #tpu.memory_space<vmem>>, vector<128x128xf32>
    tpu.vector_store %arg6[%c0_5, %c0_6], %10 {strides = array<i32>} : memref<128x128xf32, #tpu.memory_space<vmem>>, vector<128x128xf32>,
    %c0_i32_7 = arith.constant 0 : i32
    %12 = arith.cmpi eq, %arg1, %c0_i32_7 : i32
    %13 = arith.extui %12 : i1 to i32
    %c0_i32_8 = arith.constant 0 : i32
    %14 = arith.cmpi ne, %13, %c0_i32_8 : i32
    scf.if %14 {
      %c0_9 = arith.constant 0 : index
      %c0_10 = arith.constant 0 : index
      %15 = vector.load %arg6[%c0_9, %c0_10] : memref<128x128xf32, #tpu.memory_space<vmem>>, vector<128x128xf32>
      %c0_11 = arith.constant 0 : index
      %c0_12 = arith.constant 0 : index
      %16 = vector.load %arg4[%c0_11, %c0_12] : memref<1x128xf32, #tpu.memory_space<vmem>>, vector<1x128xf32>
      %17 = vector.broadcast %16 : vector<1x128xf32> to vector<128x128xf32>
      %18 = arith.addf %15, %17 : vector<128x128xf32>
      %19 = arith.truncf %18 : vector<128x128xf32> to vector<128x128xbf16>
      %c0_13 = arith.constant 0 : index
      %c0_14 = arith.constant 0 : index
      %20 = vector.load %arg5[%c0_13, %c0_14] : memref<128x128xbf16, #tpu.memory_space<vmem>>, vector<128x128xbf16>
      tpu.vector_store %arg5[%c0_13, %c0_14], %19 {strides = array<i32>} : memref<128x128xbf16, #tpu.memory_space<vmem>>, vector<128x128xbf16>,
    } else {
    }
    return
  }
  func.func @transform_0(%arg0: i32, %arg1: i32) -> (i32, i32) {
    %c0_i32 = arith.constant 0 : i32
    return %arg0, %arg1 : i32, i32
  }
  func.func @transform_1(%arg0: i32, %arg1: i32) -> (i32, i32) {
    %c0_i32 = arith.constant 0 : i32
    %c0_i32_0 = arith.constant 0 : i32
    %c0_i32_1 = arith.constant 0 : i32
    return %c0_i32, %c0_i32_0 : i32, i32
  }
  func.func @transform_2(%arg0: i32, %arg1: i32) -> (i32, i32) {
    %c0_i32 = arith.constant 0 : i32
    %c0_i32_0 = arith.constant 0 : i32
    %c0_i32_1 = arith.constant 0 : i32
    return %c0_i32, %c0_i32_0 : i32, i32
  }
  func.func @transform_3(%arg0: i32, %arg1: i32) -> (i32, i32) {
    %c0_i32 = arith.constant 0 : i32
    %c0_i32_0 = arith.constant 0 : i32
    return %arg0, %c0_i32 : i32, i32
  }
}

</mosaic_0001>

<bundles_post_ra>
// kernel: tpu_custom_call.1
= control target key start
LH: loop header
LB: loop body
LE: loop exit
PB: predicated region body
PF: predicated region fallthrough
CT: control target
= control target key end

     0   :  { %8 = vsyncpa [#allocation4], 0  ;;  %s1628_s0 = inlined_call_operand.hbm [shape: bf16[256,256], index: 0, kind: input, shape index: {}]   ;;  %s1629_s1 = inlined_call_operand.hbm [shape: bf16[256,128], index: 1, kind: input, shape index: {}]   ;;  %s1630_s2 = inlined_call_operand.vmem [shape: f32[1,128], index: 2, kind: input, shape index: {}]   ;;  %s1631_s3 = inlined_call_operand.hbm [shape: bf16[256,128], index: 3, kind: output, shape index: {}]  }
   0x1   :  { %10 = vsyncpa [#allocation4 + $0x1], 0 }
   0x2   :  { %11 = vsyncpa [#allocation7], 0 }
   0x3   :  { %12 = vsyncpa [#allocation5], 0 }
   0x4   :  { %14 = vsyncpa [#allocation5 + $0x1], 0  ;;  %s1358_s12 = smov 0   ;;  %s1360_s13 = smov 0  }
   0x5   :  { %s1362_s14 = smov 0   ;;  %s1364_s15 = smov 0  }
   0x6   :  { %s1366_s16 = smov 0   ;;  %s1368_s17 = smov 0  }
   0x7 LB: > { %s851_s18 = sadd.s32 4294967295, %s1327_s17   ;;  %s852_s19 = sadd.s32 4294967294, %s1327_s17   ;;  %s1327_s17 = sphi %s1368_s17, %s20_s17   ;;  %s1323_s16 = sphi %s1366_s16, %s1655_s16   ;;  %s1319_s15 = sphi %s1364_s15, %s1654_s15   ;;  %s1315_s14 = sphi %s1362_s14, %s1653_s14   ;;  %s1311_s13 = sphi %s1360_s13, %s1652_s13   ;;  %s1307_s12 = sphi %s1358_s12, %s1651_s12  }
   0x8   : > { %p54_p0 = scmp.ne.s32.totalorder %s1311_s13, %s1307_s12  ;;  %p1392_p1 = scmp.eq.s32.totalorder %s851_s18, 0 }
   0x9   : > { %p1396_p2 = scmp.eq.s32.totalorder %s851_s18, 1  ;;  %p126_p3 = scmp.eq.s32.totalorder %s852_s19, 1 }
   0xa   : > { %s1636_s20 = scalar_select %p1392_p1, 1, 0 }
   0xb   : > { %s1637_s21 = scalar_select %p1396_p2, 1, 0 }
   0xc   : > { %p1402_p4 = por %p1392_p1, %p54_p0  ;;  %p853_p5 = scmp.ge.s32.totalorder %s1327_s17, 1 }
   0xd   : > { %p1407_p6 = por %p126_p3, %p54_p0  ;;  %p133_p7 = scmp.lt.s32.totalorder %s1327_s17, 3 }
   0xe   : > { %s1638_s22 = scalar_select %p1402_p4, 1, 0 }
   0xf   : > { %s1639_s23 = scalar_select %p1407_p6, 1, 0 }
  0x10   : > { %p1412_p8 = pnand %p853_p5, %p133_p7  ;;  %s1329_s25 = smov [#allocation6]  }
  0x11   : > { %s145_s26 = sshll.u32 %s1329_s25, 4  ;;  %s32_s28 = sadd.s32 1, %s1323_s16  ;;  %s146_s26 = int_to_ptr.vmem [resolvable:$true] %s145_s26 }
  0x12   : > { %s1640_s24 = scalar_select %p1412_p8, 1, 0 }
  0x13   : > { %p1072_p9 = pneg %p1412_p8  ;;  %s1183_s4 = scalar_lea.hbm %s1629_s1, 2048 }
  0x14   : > { %p1184_p12 = scmp.ne.s32.totalorder %s1629_s1, %s1183_s4  ;;  %p1190_p5 = scmp.lt.u32.totalorder %s1183_s4, %s1629_s1 }
  0x15   : > { %p1421_p11 = pnand %p1072_p9, %p1392_p1 }
  0x17   : > { %p1185_p13 = pneg %p1421_p11 }
  0x19   : > { %p1186_p0 = pnand %p1185_p13, %p1184_p12 }
  0x1b   : > { %p1187_p3 = pneg %p1186_p0 }
  0x1d   : > { %p1192_p7 = pnand %p1190_p5, %p1187_p3 }
  0x1f   : > { %1195 = shalt.err (!%p1192_p7)
}
  0x20   : > { %s1196_s9 = scalar_lea.vmem %s146_s26, 2048  ;;  %p1204_p1 = scmp.lt.s32.totalorder %s146_s26, %s146_s26 }
  0x21   : > { %p1197_p9 = scmp.ne.s32.totalorder %s146_s26, %s1196_s9  ;;  %p1205_p4 = scmp.lt.s32.totalorder %s1196_s9, %s1196_s9 }
  0x23   : > { %p1199_p10 = pnand %p1197_p9, %p1185_p13  ;;  %p1206_p8 = por %p1205_p4, %p1204_p1 }
  0x25   : > { %p1200_p6 = pneg %p1199_p10 }
  0x27   : > { %p1207_p2 = pnand %p1206_p8, %p1200_p6 }
  0x29   : > { %1210 = shalt.err (!%p1207_p2)
}
  0x2a   : > { %s1330_s10 = smov 64   ;;  %s1331_s11 = smov 4  }
  0x2b   : > { %1075 = dma.hbm_to_vmem [thread:$0]  (!%p1421_p11), %s1629_s1, 2048, %s146_s26, [#allocation7], %s1330_s10, %s1330_s10, %s1331_s11  }
  0x2c   : > { %p34_p1 = scmp.ge.s32.totalorder %s32_s28, 2  ;;  %s41_s25 = sadd.s32 1, %s1315_s14 }
  0x2d   : > { %p48_p2 = scmp.ne.s32.totalorder %s1315_s14, %s1311_s13  ;;  %p49_p4 = scmp.eq.s32.totalorder %s1327_s17, 0 }
  0x2e   : > { %s1657_s28 = smov (%p34_p1, %s32_s28), 0  ;;  %p1643_p8 = scmp.ne.s32.totalorder %s1637_s21, 0 }
  0x2f   : > { %p1448_p6 = por %p49_p4, %p48_p2  ;;  %s36_s27 = ssub.s32 %s1323_s16, %s1657_s28 }
  0x30   : > { %p1454_p10 = por %p1643_p8, %p48_p2  ;;  %p1085_p12 = scmp.lt.s32.totalorder %s1327_s17, 2 }
  0x31   : > { %p39_p11 = scmp.eq.s32.totalorder %s36_s27, 0  ;;  %s162_s26 = sand.u32 1, %s1315_s14  }
  0x32   : > { %s856_s4 = sshll.u32 %s162_s26, 7  ;;  %s919_s6 = sshll.u32 %s1323_s16, 11 }
  0x33   : > { %s1463_s5 = scalar_select %p39_p11, %s1315_s14, %s41_s25  }
  0x34   : > { %s1469_s9 = scalar_lea.hbm %s1628_s0, %s919_s6  ;;  %s166_s21 = scalar_lea.vmem [#allocation3], %s856_s4 }
  0x35   : > { %s176_s10 = sshll.u32 %s166_s21, 4  ;;  %p1475_p13 = pnand %p1085_p12, %p1448_p6  ;;  %s1471_s10 = int_to_ptr.vmem [resolvable:$true] %s176_s10 }
  0x36   : > { %s1479_s18 = scalar_lea.sflag [#allocation4], %s162_s26  ;;  %s1211_s19 = scalar_lea.hbm %s1469_s9, 2048 }
  0x37   : > { %p1212_p0 = scmp.ne.s32.totalorder %s1469_s9, %s1211_s19  ;;  %p1213_p3 = pneg %p1475_p13 }
  0x38   : > { %s1216_s29 = scalar_lea.hbm %s1628_s0, 4096  ;;  %p1217_p9 = scmp.lt.u32.totalorder %s1469_s9, %s1628_s0 }
  0x39   : > { %p1214_p5 = pnand %p1213_p3, %p1212_p0  ;;  %p1218_p1 = scmp.lt.u32.totalorder %s1216_s29, %s1211_s19 }
  0x3a   : > { %p1220_p4 = scmp.lt.u32.totalorder %s1211_s19, %s1469_s9 }
  0x3b   : > { %p1215_p7 = pneg %p1214_p5  ;;  %p1219_p2 = por %p1218_p1, %p1217_p9 }
  0x3d   : > { %p1221_p6 = por %p1220_p4, %p1219_p2 }
  0x3f   : > { %p1222_p8 = pnand %p1221_p6, %p1215_p7 }
  0x41   : > { %1225 = shalt.err (!%p1222_p8)
}
  0x42   : > { %s1226_s26 = scalar_lea.vmem %s1471_s10, 2048  ;;  %s1332_s7 = smov [#allocation3]  }
  0x43   : > { %p1227_p12 = scmp.ne.s32.totalorder %s1471_s10, %s1226_s26  ;;  %s1231_s8 = sshll.u32 %s1332_s7, 4  ;;  %s1232_s8 = int_to_ptr.vmem [resolvable:$false] %s1231_s8 }
  0x44   : > { %s1233_s21 = scalar_lea.vmem %s1232_s8, 4096  ;;  %p1234_p5 = scmp.lt.s32.totalorder %s1471_s10, %s1232_s8 }
  0x45   : > { %p1229_p11 = pnand %p1227_p12, %p1213_p3  ;;  %p1235_p9 = scmp.lt.s32.totalorder %s1233_s21, %s1226_s26 }
  0x47   : > { %p1230_p0 = pneg %p1229_p11  ;;  %p1236_p1 = por %p1235_p9, %p1234_p5 }
  0x49   : > { %p1237_p2 = pnand %p1236_p1, %p1230_p0 }
  0x4b   : > { %1240 = shalt.err (!%p1237_p2)
}
  0x4c   : > { %s1333_s19 = smov 128   ;;  %s1334_s25 = smov 8  }
  0x4d   : > { %1079 = dma.hbm_to_vmem [thread:$0]  (!%p1475_p13), %s1469_s9, 2048, %s1471_s10, %s1479_s18, %s1333_s19, %s1333_s19, %s1334_s25  }
  0x4e   : > { %p1646_p3 = scmp.ne.s32.totalorder %s1640_s24, 0 }
  0x4f   : > { %s1510_s27 = sand.u32 (!%p1646_p3), 1, %s1311_s13   ;;  %p1647_p7 = scmp.ne.s32.totalorder (!%p1646_p3), %s1638_s22, 0 }
  0x50   : > { %188 = sbr.rel (%p1646_p3) target bundleno = 384 (0x180), region = 32  ;;  %s861_s29 = sshll.u32 (!%p1646_p3), %s1510_s27, 7 }
  0x51   : > { %s191_s4 = scalar_lea.sflag (!%p1646_p3), [#allocation4], %s1510_s27  ;;  %s1514_s6 = scalar_lea.vmem (!%p1646_p3), [#allocation3], %s861_s29 }
  0x57   : > { %1294 = dma.done.wait (%p1647_p7), %s191_s4, 2048  }
  0x58   : > { %1296 = vsyncadd (%p1647_p7), %s191_s4, 4294965248  ;;  %p1648_p13 = scmp.ne.s32.totalorder %s1636_s20, 0 }
  0x5a   : > { %1298 = dma.done.wait (%p1648_p13), [#allocation7], 2048  }
  0x5b   : > { %1300 = vsyncadd (%p1648_p13), [#allocation7], 4294965248  ;;  %v1143_v0 = vld [vmem:[#allocation6 + $0x40] sm:$0xff]   ;;  %v1145_v2 = vld [vmem:[#allocation6 + $0x48] sm:$0xff]   ;;  %s863_s24 = sshll.u32 %s1510_s27, 6  ;;  %s936_s10 = sshll.u32 %s1319_s15, 10 }
  0x5c   : > { %v1144_v1 = vld [vmem:[#allocation6] sm:$0xff]   ;;  %984 = vmatprep.subr.bf16.mxu0 %v1143_v0  ;;  %1048 = vmatprep.subr.bf16.mxu1 %v1143_v0  ;;  %v1146_v3 = vld [vmem:[#allocation6 + $0x8] sm:$0xff]   ;;  %v1147_v4 = vld [vmem:[#allocation6 + $0x50] sm:$0xff]   ;;  %s1550_s9 = scalar_lea.vmem [#allocation8], %s863_s24  ;;  %s1575_s7 = scalar_lea.hbm %s1631_s3, %s936_s10 }
  0x5d   : > { %985 = vmatpush3.bf16.msra.mxu0 %v1144_v1  ;;  %1056 = vmatpush3.bf16.msra.mxu1 %v1144_v1  ;;  %v1148_v5 = vld [vmem:[#allocation6 + $0x10] sm:$0xff]   ;;  %v1149_v6 = vld [vmem:[#allocation6 + $0x58] sm:$0xff]   ;;  %v1151_v8 = vld [vmem:[#allocation6 + $0x60] sm:$0xff]   ;;  %s755_s11 = sshll.u32 %s1550_s9, 4  ;;  %s742_s15 = scalar_lea.sflag [#allocation5], %s1510_s27  ;;  %s1577_s11 = int_to_ptr.vmem [resolvable:$true] %s755_s11 }
  0x5e   : > { %986 = vmatprep.subr.bf16.mxu0 %v1145_v2  ;;  %1049 = vmatprep.subr.bf16.mxu1 %v1145_v2  ;;  %v1150_v7 = vld [vmem:[#allocation6 + $0x18] sm:$0xff]   ;;  %v1152_v9 = vld [vmem:[#allocation6 + $0x20] sm:$0xff]   ;;  %v1153_v10 = vld [vmem:[#allocation6 + $0x68] sm:$0xff]   ;;  %s1241_s8 = scalar_lea.vmem %s1577_s11, 1024  ;;  %s1335_s21 = smov [#allocation8]  }
  0x5f   : > { %v1161_v11 = vld [vmem:[%s1514_s6 + $0x4] ss:$8 sps:$4 sm:$0xff]   ;;  %v1155_v14 = vld [vmem:[#allocation6 + $0x70] sm:$0xff]   ;;  %v1157_v16 = vld [vmem:[#allocation6 + $0x78] sm:$0xff]   ;;  %p1242_p4 = scmp.ne.s32.totalorder %s1577_s11, %s1241_s8  ;;  %s1245_s19 = sshll.u32 %s1335_s21, 4  ;;  %s1246_s19 = int_to_ptr.vmem [resolvable:$false] %s1245_s19 }
  0x60   : > { %v1164_v12 = vld [vmem:[%s1514_s6 + $0x44] ss:$8 sps:$4 sm:$0xff]   ;;  %522 = vmatprep.mubr.bf16.mxu0 %v1161_v11  ;;  %v1156_v15 = vld [vmem:[#allocation6 + $0x30] sm:$0xff]   ;;  %v1158_v17 = vld [vmem:[#allocation6 + $0x38] sm:$0xff]   ;;  %s1247_s25 = scalar_lea.vmem %s1246_s19, 2048  ;;  %p1248_p12 = scmp.lt.s32.totalorder %s1577_s11, %s1246_s19 }
  0x61   : > { %987 = vmatpush3.bf16.msra.mxu0 %v1146_v3  ;;  %1057 = vmatpush3.bf16.msra.mxu1 %v1146_v3  ;;  %v1154_v13 = vld [vmem:[#allocation6 + $0x28] sm:$0xff]   ;;  %v1165_v20 = vld [vmem:[%s1514_s6 + $0x14] ss:$8 sps:$4 sm:$0xff]   ;;  %v1169_v22 = vld [vmem:[%s1514_s6 + $0x10] ss:$8 sps:$4 sm:$0xff]   ;;  %p1243_p6 = pnand %p1242_p4, %p1454_p10  ;;  %p1249_p11 = scmp.lt.s32.totalorder %s1247_s25, %s1241_s8 }
  0x62   : > { %988 = vmatprep.subr.bf16.mxu0 %v1147_v4  ;;  %1050 = vmatprep.subr.bf16.mxu1 %v1147_v4  ;;  %v1159_v18 = vld [vmem:[%s1514_s6] ss:$8 sps:$4 sm:$0xff]   ;;  %v1167_v21 = vld [vmem:[%s1514_s6 + $0x54] ss:$8 sps:$4 sm:$0xff]   ;;  %v1170_v23 = vld [vmem:[%s1514_s6 + $0x50] ss:$8 sps:$4 sm:$0xff]  }
  0x63   : > { %554 = vmatprep.mubr.bf16.mxu1 %v1164_v12  ;;  %v1162_v19 = vld [vmem:[%s1514_s6 + $0x40] ss:$8 sps:$4 sm:$0xff]   ;;  %v1171_v24 = vld [vmem:[%s1514_s6 + $0x24] ss:$8 sps:$4 sm:$0xff]   ;;  %v1177_v28 = vld [vmem:[%s1514_s6 + $0x34] ss:$8 sps:$4 sm:$0xff]   ;;  %p1244_p8 = pneg %p1243_p6  ;;  %p1250_p0 = por %p1249_p11, %p1248_p12 }
  0x64   : > { %v1173_v25 = vld [vmem:[%s1514_s6 + $0x64] ss:$8 sps:$4 sm:$0xff]   ;;  %v1175_v26 = vld [vmem:[%s1514_s6 + $0x20] ss:$8 sps:$4 sm:$0xff]   ;;  %v1179_v29 = vld [vmem:[%s1514_s6 + $0x74] ss:$8 sps:$4 sm:$0xff]  }
  0x65   : > { %989 = vmatpush3.bf16.msra.mxu0 %v1148_v5  ;;  %1058 = vmatpush3.bf16.msra.mxu1 %v1148_v5  ;;  %v1176_v27 = vld [vmem:[%s1514_s6 + $0x60] ss:$8 sps:$4 sm:$0xff]   ;;  %v1181_v30 = vld [vmem:[%s1514_s6 + $0x30] ss:$8 sps:$4 sm:$0xff]   ;;  %p1251_p5 = pnand %p1250_p0, %p1244_p8 }
  0x66   : > { %990 = vmatprep.subr.bf16.mxu0 %v1149_v6  ;;  %1051 = vmatprep.subr.bf16.mxu1 %v1149_v6  ;;  %v1182_v31 = vld [vmem:[%s1514_s6 + $0x70] ss:$8 sps:$4 sm:$0xff]   ;;  %v1543_v40 = vld [vmem:[%s1630_s2] ss:$0 sm:$0xff] }
  0x69   : > { %991 = vmatpush3.bf16.msra.mxu0 %v1150_v7  ;;  %1059 = vmatpush3.bf16.msra.mxu1 %v1150_v7 }
  0x6a   : > { %992 = vmatprep.subr.bf16.mxu0 %v1151_v8  ;;  %1052 = vmatprep.subr.bf16.mxu1 %v1151_v8 }
  0x6d   : > { %993 = vmatpush3.bf16.msra.mxu0 %v1152_v9  ;;  %1060 = vmatpush3.bf16.msra.mxu1 %v1152_v9 }
  0x6e   : > { %994 = vmatprep.subr.bf16.mxu0 %v1153_v10  ;;  %1053 = vmatprep.subr.bf16.mxu1 %v1153_v10 }
  0x71   : > { %995 = vmatpush3.bf16.msra.mxu0 %v1154_v13  ;;  %1061 = vmatpush3.bf16.msra.mxu1 %v1154_v13 }
  0x72   : > { %996 = vmatprep.subr.bf16.mxu0 %v1155_v14  ;;  %1054 = vmatprep.subr.bf16.mxu1 %v1155_v14 }
  0x75   : > { %997 = vmatpush3.bf16.msra.mxu0 %v1156_v15  ;;  %1062 = vmatpush3.bf16.msra.mxu1 %v1156_v15 }
  0x76   : > { %998 = vmatprep.subr.bf16.mxu0 %v1157_v16  ;;  %1055 = vmatprep.subr.bf16.mxu1 %v1157_v16 }
  0x79   : > { %999 = vmatpush3.bf16.msra.mxu0 %v1158_v17  ;;  %1063 = vmatpush3.bf16.msra.mxu1 %v1158_v17 }
  0x7c   : > { %523 = vmatmul.mubr.bf16.vlgmr.msra.gmra.mrb[0].mxu0 %v1159_v18  ;;  %555 = vmatmul.mubr.bf16.vlgmr.msra.gmra.mrb[0].mxu1 %v1162_v19 }
  0x7d   : > { %530 = vmatprep.mubr.bf16.mxu0 %v1165_v20  ;;  %562 = vmatprep.mubr.bf16.mxu1 %v1167_v21 }
  0x84   : > { %531 = vmatmul.mubr.bf16.gmra.mrb[4].mxu0 %v1169_v22  ;;  %563 = vmatmul.mubr.bf16.gmra.mrb[4].mxu1 %v1170_v23 }
  0x85   : > { %538 = vmatprep.mubr.bf16.mxu0 %v1171_v24  ;;  %570 = vmatprep.mubr.bf16.mxu1 %v1173_v25 }
  0x8c   : > { %539 = vmatmul.mubr.bf16.gmra.mrb[8].mxu0 %v1175_v26  ;;  %571 = vmatmul.mubr.bf16.gmra.mrb[8].mxu1 %v1176_v27 }
  0x8d   : > { %546 = vmatprep.mubr.bf16.mxu0 %v1177_v28  ;;  %578 = vmatprep.mubr.bf16.mxu1 %v1179_v29 }
  0x94   : > { %547 = vmatmul.mubr.bf16.gmra.mrb[12].mxu0 %v1181_v30  ;;  %579 = vmatmul.mubr.bf16.gmra.mrb[12].mxu1 %v1182_v31 }
 0x14f   : > { %v1000_v32 = vpop.f32.mrb[0].mxu0  ;;  %v1024_v33 = vpop.f32.mrb[0].mxu1 }
 0x150   : > { %v1001_v34 = vpop.f32.mrb[1].mxu0  ;;  %v1025_v35 = vpop.f32.mrb[1].mxu1 }
 0x151   : > { %v1002_v36 = vadd.f32 %v1001_v34, %v1000_v32  ;;  %v1026_v37 = vadd.f32 %v1025_v35, %v1024_v33  ;;  %v1003_v38 = vpop.f32.mrb[2].mxu0  ;;  %v1027_v39 = vpop.f32.mrb[2].mxu1 }
 0x152   : > { %v1004_v41 = vpop.f32.mrb[3].mxu0  ;;  %v1028_v42 = vpop.f32.mrb[3].mxu1 }
 0x153   : > { %v1005_v43 = vadd.f32 %v1004_v41, %v1003_v38  ;;  %v1029_v44 = vadd.f32 %v1028_v42, %v1027_v39  ;;  %v645_v45 = vadd.f32 %v1002_v36, %v1543_v40  ;;  %v653_v46 = vadd.f32 %v1026_v37, %v1543_v40 }
 0x155   : > { %v646_v47 = vadd.f32 %v1005_v43, %v1543_v40  ;;  %v654_v48 = vadd.f32 %v1029_v44, %v1543_v40 }
 0x157   : > { %v940_v49 = vpack.c.bf16 %v646_v47, %v645_v45  ;;  %v960_v50 = vpack.c.bf16 %v654_v48, %v653_v46  ;;  %v1006_v51 = vpop.f32.mrb[4].mxu0  ;;  %v1030_v52 = vpop.f32.mrb[4].mxu1 }
 0x158   : > { %v1007_v53 = vpop.f32.mrb[5].mxu0  ;;  %v1031_v54 = vpop.f32.mrb[5].mxu1 }
 0x159   : > { %941 = vst [vmem:[%s1550_s9] sm:$0xff] %v940_v49   ;;  %980 = vst [vmem:[%s1550_s9 + $0x20] sm:$0xff] %v960_v50   ;;  %v1008_v55 = vadd.f32 %v1007_v53, %v1006_v51  ;;  %v1032_v56 = vadd.f32 %v1031_v54, %v1030_v52  ;;  %v1009_v57 = vpop.f32.mrb[6].mxu0  ;;  %v1033_v58 = vpop.f32.mrb[6].mxu1 }
 0x15a   : > { %v1010_v59 = vpop.f32.mrb[7].mxu0  ;;  %v1034_v60 = vpop.f32.mrb[7].mxu1 }
 0x15b   : > { %v1011_v61 = vadd.f32 %v1010_v59, %v1009_v57  ;;  %v1035_v62 = vadd.f32 %v1034_v60, %v1033_v58  ;;  %v647_v63 = vadd.f32 %v1008_v55, %v1543_v40  ;;  %v655_v0 = vadd.f32 %v1032_v56, %v1543_v40 }
 0x15d   : > { %v648_v1 = vadd.f32 %v1011_v61, %v1543_v40  ;;  %v656_v2 = vadd.f32 %v1035_v62, %v1543_v40 }
 0x15f   : > { %v945_v3 = vpack.c.bf16 %v648_v1, %v647_v63  ;;  %v965_v4 = vpack.c.bf16 %v656_v2, %v655_v0  ;;  %v1012_v5 = vpop.f32.mrb[8].mxu0  ;;  %v1036_v6 = vpop.f32.mrb[8].mxu1 }
 0x160   : > { %v1013_v7 = vpop.f32.mrb[9].mxu0  ;;  %v1037_v8 = vpop.f32.mrb[9].mxu1 }
 0x161   : > { %977 = vst [vmem:[%s1550_s9 + $0x8] sm:$0xff] %v945_v3   ;;  %981 = vst [vmem:[%s1550_s9 + $0x28] sm:$0xff] %v965_v4   ;;  %v1014_v9 = vadd.f32 %v1013_v7, %v1012_v5  ;;  %v1038_v10 = vadd.f32 %v1037_v8, %v1036_v6  ;;  %v1015_v11 = vpop.f32.mrb[10].mxu0  ;;  %v1039_v12 = vpop.f32.mrb[10].mxu1 }
 0x162   : > { %v1016_v13 = vpop.f32.mrb[11].mxu0  ;;  %v1040_v14 = vpop.f32.mrb[11].mxu1 }
 0x163   : > { %v1017_v15 = vadd.f32 %v1016_v13, %v1015_v11  ;;  %v1041_v16 = vadd.f32 %v1040_v14, %v1039_v12  ;;  %v649_v17 = vadd.f32 %v1014_v9, %v1543_v40  ;;  %v657_v18 = vadd.f32 %v1038_v10, %v1543_v40 }
 0x165   : > { %v650_v19 = vadd.f32 %v1017_v15, %v1543_v40  ;;  %v658_v20 = vadd.f32 %v1041_v16, %v1543_v40 }
 0x167   : > { %v950_v21 = vpack.c.bf16 %v650_v19, %v649_v17  ;;  %v970_v22 = vpack.c.bf16 %v658_v20, %v657_v18  ;;  %v1018_v23 = vpop.f32.mrb[12].mxu0  ;;  %v1042_v24 = vpop.f32.mrb[12].mxu1 }
 0x168   : > { %v1019_v25 = vpop.f32.mrb[13].mxu0  ;;  %v1043_v26 = vpop.f32.mrb[13].mxu1 }
 0x169   : > { %978 = vst [vmem:[%s1550_s9 + $0x10] sm:$0xff] %v950_v21   ;;  %982 = vst [vmem:[%s1550_s9 + $0x30] sm:$0xff] %v970_v22   ;;  %v1020_v27 = vadd.f32 %v1019_v25, %v1018_v23  ;;  %v1044_v28 = vadd.f32 %v1043_v26, %v1042_v24  ;;  %v1021_v29 = vpop.f32.mrb[14].mxu0  ;;  %v1045_v30 = vpop.f32.mrb[14].mxu1 }
 0x16a   : > { %v1022_v31 = vpop.f32.mrb[15].mxu0  ;;  %v1046_v32 = vpop.f32.mrb[15].mxu1 }
 0x16b   : > { %v1023_v33 = vadd.f32 %v1022_v31, %v1021_v29  ;;  %v1047_v34 = vadd.f32 %v1046_v32, %v1045_v30  ;;  %v651_v35 = vadd.f32 %v1020_v27, %v1543_v40  ;;  %v659_v36 = vadd.f32 %v1044_v28, %v1543_v40 }
 0x16d   : > { %v652_v37 = vadd.f32 %v1023_v33, %v1543_v40  ;;  %v660_v38 = vadd.f32 %v1047_v34, %v1543_v40 }
 0x16f   : > { %v955_v39 = vpack.c.bf16 %v652_v37, %v651_v35  ;;  %v975_v41 = vpack.c.bf16 %v660_v38, %v659_v36 }
 0x171   : > { %979 = vst [vmem:[%s1550_s9 + $0x18] sm:$0xff] %v955_v39   ;;  %983 = vst [vmem:[%s1550_s9 + $0x38] sm:$0xff] %v975_v41  }
 0x172   : > { %1254 = shalt.err (!%p1251_p5)
}
 0x173   : > { %s1255_s29 = scalar_lea.hbm %s1575_s7, 1024  ;;  %s1259_s20 = scalar_lea.hbm %s1631_s3, 2048 }
 0x174   : > { %p1256_p9 = scmp.ne.s32.totalorder %s1575_s7, %s1255_s29  ;;  %p1260_p3 = scmp.lt.u32.totalorder %s1575_s7, %s1631_s3 }
 0x175   : > { %p1261_p7 = scmp.lt.u32.totalorder %s1259_s20, %s1255_s29  ;;  %p1263_p4 = scmp.lt.u32.totalorder %s1255_s29, %s1575_s7 }
 0x176   : > { %p1257_p1 = pnand %p1256_p9, %p1454_p10 }
 0x177   : > { %p1262_p13 = por %p1261_p7, %p1260_p3 }
 0x178   : > { %p1258_p2 = pneg %p1257_p1 }
 0x179   : > { %p1264_p6 = por %p1263_p4, %p1262_p13 }
 0x17b   : > { %p1265_p8 = pnand %p1264_p6, %p1258_p2 }
 0x17d   : > { %1268 = shalt.err (!%p1265_p8)
}
 0x17e   : > { %s1336_s9 = smov 64   ;;  %s1337_s10 = smov 4  }
 0x17f   : > { %1070 = dma.vmem_to_hbm [thread:$0]  (%p1454_p10), %s1577_s11, 1024, %s1575_s7, %s742_s15, %s1336_s9, %s1336_s9, %s1337_s10  }
 0x180 PF: > { %s770_s18 = sand.u32 1, %s1307_s12   ;;  %p1649_p12 = scmp.ne.s32.totalorder %s1639_s23, 0 }
 0x181   : > { %p1650_p11 = scmp.ge.s32.totalorder %s1327_s17, 2  ;;  %s771_s26 = scalar_lea.sflag [#allocation5], %s770_s18 }
 0x183   : > { %p1081_p0 = pnand %p1650_p11, %p1649_p12 }
 0x185   : > { %1302 = dma.done.wait (!%p1081_p0), %s771_s26, 1024  }
 0x186   : > { %1304 = vsyncadd (!%p1081_p0), %s771_s26, 4294966272  ;;  %s20_s17 = sadd.s32 1, %s1327_s17   ;;  %s1651_s12 = smov %s1311_s13 }
 0x187   : > { %p17_p5 = scmp.ge.s32.totalorder %s20_s17, 4   ;;  %s1652_s13 = smov %s1315_s14 }
 0x188   : > { %s1653_s14 = smov %s1463_s5  ;;  %s1654_s15 = smov %s1323_s16 }
 0x189   : > { %s1655_s16 = smov %s1657_s28  ;;  %19 = sbr.rel (!%p17_p5) target bundleno = 7 (0x7), region = 90 }
 0x190   :  { %776 = vsyncpa [#allocation4], 1 }
 0x191   :  { %778 = vsyncpa [#allocation4 + $0x1], 1 }
 0x192   :  { %779 = vsyncpa [#allocation7], 1 }
 0x193   :  { %780 = vsyncpa [#allocation5], 1 }
 0x194   :  { %782 = vsyncpa [#allocation5 + $0x1], 1 }

</bundles_post_ra>
